<compile_context>
chip_gen: v5e
topology: v5e:2x2
jax: 0.10.0
libtpu: 0.0.40
codegen_flags: <defaults>
</compile_context>

<pallas_src>
import math

import jax
import jax.numpy as jnp
from jax.experimental import pallas as pl
from jax.experimental.pallas import tpu as pltpu

# ---------------- config (mirrors PolicyNet.__init__ args) -------------------
EMB_SIZE = 8
KEY_SIZE = 32
META_SIZE = 2
COORDI_SIZE = 4
NUM_RNK = 3
EVAL_NODE = "[64,32][16]"
USE_MULTIMODAL = False
IMG_FEAT_SIZE = 0
BATCH = 8

CRD_FEAT = EMB_SIZE * META_SIZE * COORDI_SIZE  # 64
PAD = 128                                      # lane-padded block width

_buf = EVAL_NODE[1:-1].split("][")
NUM_HID_EVAL = list(map(int, _buf[0].split(",")))  # [64, 32]
NUM_HID_RNK = list(map(int, _buf[1].split(",")))   # [16]
EVAL_OUT = NUM_HID_EVAL[-1]                        # 32


# ----------------------------- fused kernel ----------------------------------
def make_fused_kernel(batch, n_eval, n_rnk):
    """kernel(x_ref, w_ref, o_ref).

    x_ref : (NUM_RNK*batch, 128) f32, lanes = [crd | req | zeros | 1.0@127].
    w_ref : (n_blocks, 128, 128) bf16 padded weight slab (biases folded in as
            row 127, activated by the ones lane).
    o_ref : (batch, 128) f32 lane-dense output; real scores live in lanes 0:3.
    """

    def kernel(x_ref, w_ref, o_ref):
        x = x_ref[...]                                    # (R*B, 128) f32
        h = x
        # ----- eval MLP (shared over the rank-stacked rows) -----
        for i in range(n_eval):
            h = jnp.maximum(
                jnp.dot(h.astype(jnp.bfloat16), w_ref[i],
                        preferred_element_type=jnp.float32), 0.0)

        # ----- ranking layer 1: K=128 split into per-rank + req partial matmuls
        # (summed in the f32 accumulator; no lane concatenate). The req chunk's
        # block also carries bias br1 and re-injects the ones lane.
        z = jnp.dot(x[0:batch].astype(jnp.bfloat16),
                    w_ref[n_eval + NUM_RNK],
                    preferred_element_type=jnp.float32)   # req term + bias
        for r in range(NUM_RNK):
            z = z + jnp.dot(h[r * batch:(r + 1) * batch].astype(jnp.bfloat16),
                            w_ref[n_eval + r],
                            preferred_element_type=jnp.float32)
        if n_rnk > 1:
            z = jnp.maximum(z, 0.0)

        # ----- remaining ranking layers (hidden: Linear+ReLU, last: Linear) --
        idx = n_eval + NUM_RNK + 1
        for j in range(1, n_rnk):
            z = jnp.dot(z.astype(jnp.bfloat16), w_ref[idx],
                        preferred_element_type=jnp.float32)
            idx += 1
            if j < n_rnk - 1:
                z = jnp.maximum(z, 0.0)

        o_ref[...] = z                                    # (B, 128) lane-dense

    return kernel


# --------------------------- parameter init ----------------------------------
def init_linear(key, fan_in, fan_out):
    """Deterministic init mimicking torch.nn.Linear (uniform +-1/sqrt(fan_in)).
    Weight stored already transposed as (in, out)."""
    kw, kb = jax.random.split(key)
    bound = 1.0 / math.sqrt(fan_in)
    w = jax.random.uniform(kw, (fan_in, fan_out), jnp.float32, -bound, bound)
    b = jax.random.uniform(kb, (1, fan_out), jnp.float32, -bound, bound)
    return w, b


def build_params(key):
    eval_params, rnk_params = [], []
    num_in = CRD_FEAT + KEY_SIZE + (IMG_FEAT_SIZE if USE_MULTIMODAL else 0)
    for h in NUM_HID_EVAL:
        key, sub = jax.random.split(key)
        eval_params.append(init_linear(sub, num_in, h))
        num_in = h
    num_in = EVAL_OUT * NUM_RNK + KEY_SIZE
    for h in NUM_HID_RNK + [NUM_RNK]:
        key, sub = jax.random.split(key)
        rnk_params.append(init_linear(sub, num_in, h))
        num_in = h
    return eval_params, rnk_params


# ---------------------- padded weight-slab construction ----------------------
def _make_block(w, b, in_off, ones_lane):
    """One (PAD, PAD) f32 block: rows [in_off:in_off+fan_in, 0:fan_out] = w,
    row PAD-1 = bias (lanes 0:fan_out) and 1.0 at lane PAD-1 if ones_lane."""
    fan_in, fan_out = w.shape
    assert in_off + fan_in <= PAD - 1, "layer fan_in too wide for padded block"
    assert fan_out <= PAD - 1, "layer fan_out too wide for padded block"
    blk = jnp.zeros((PAD, PAD), jnp.float32)
    blk = blk.at[in_off:in_off + fan_in, :fan_out].set(w)
    if b is not None:
        blk = blk.at[PAD - 1, :fan_out].set(jnp.reshape(b, (-1,)))
    if ones_lane:
        blk = blk.at[PAD - 1, PAD - 1].set(1.0)
    return blk


def build_weight_slab(eval_params, rnk_params):
    """Returns (n_blocks, PAD, PAD) bf16 slab.

    Block order: [eval layers...],
                 [rnk layer-1 rank chunks (r=0..NUM_RNK-1)],
                 [rnk layer-1 req chunk (+ bias + ones)],
                 [remaining rnk layers...].
    """
    n_rnk = len(rnk_params)
    eval_out = eval_params[-1][0].shape[1]
    blocks = []
    for (w, b) in eval_params:
        blocks.append(_make_block(w, b, in_off=0, ones_lane=True))
    w1, b1 = rnk_params[0]
    for r in range(NUM_RNK):
        blocks.append(_make_block(w1[r * eval_out:(r + 1) * eval_out],
                                  None, in_off=0, ones_lane=False))
    blocks.append(_make_block(w1[NUM_RNK * eval_out:], b1,
                              in_off=CRD_FEAT, ones_lane=(n_rnk > 1)))
    for j, (w, b) in enumerate(rnk_params[1:], start=1):
        blocks.append(_make_block(w, b, in_off=0, ones_lane=(j < n_rnk - 1)))
    return jnp.stack(blocks).astype(jnp.bfloat16)


# ------------------------------ wrapper ---------------------------------------
def policy_net_forward(req, crd, eval_params, rnk_params):
    B = req.shape[0]
    n_eval, n_rnk = len(eval_params), len(rnk_params)
    assert CRD_FEAT + KEY_SIZE + 1 <= PAD

    # Rank-stack crd and tile req in XLA (cheap, fuses with producers):
    # rows r*B+b = [crd[b, r, :], req[b], zeros, 1.0].
    x_crd = jnp.transpose(crd, (1, 0, 2)).reshape(NUM_RNK * B, CRD_FEAT)
    x_req = jnp.tile(req, (NUM_RNK, 1))
    n_zero = PAD - CRD_FEAT - KEY_SIZE - 1
    x_aug = jnp.concatenate(
        [x_crd, x_req,
         jnp.zeros((NUM_RNK * B, n_zero), jnp.float32),
         jnp.ones((NUM_RNK * B, 1), jnp.float32)], axis=1)   # (R*B, 128) f32

    w_slab = build_weight_slab(eval_params, rnk_params)       # (7, 128, 128) bf16

    vmem = pl.BlockSpec(memory_space=pltpu.MemorySpace.VMEM)
    out = pl.pallas_call(
        make_fused_kernel(B, n_eval, n_rnk),
        out_shape=jax.ShapeDtypeStruct((B, PAD), jnp.float32),
        in_specs=[vmem, vmem],
        out_specs=vmem,
    )(x_aug, w_slab)
    return out[:, :NUM_RNK]                                    # lane-dense -> slice in XLA


# ---------------------------- pure-JAX reference ------------------------------
def reference_forward(req, crd, eval_params, rnk_params):
    crd_tr = jnp.transpose(crd, (1, 0, 2))
    outs = []
    for i in range(NUM_RNK):
        x = jnp.concatenate([crd_tr[i], req], axis=1)
        for w, b in eval_params:
            x = jnp.maximum(x @ w + b, 0.0)
        outs.append(x)
    x = jnp.concatenate(outs + [req], axis=1)
    for j, (w, b) in enumerate(rnk_params):
        x = x @ w + b
        if j < len(rnk_params) - 1:
            x = jnp.maximum(x, 0.0)
    return x


# --------------------------------- main ---------------------------------------
if __name__ == "__main__":
    key = jax.random.PRNGKey(0)
    k_req, k_crd, k_par = jax.random.split(key, 3)

    req = jax.random.normal(k_req, (BATCH, KEY_SIZE), jnp.float32)
    crd = jax.random.normal(k_crd, (BATCH, NUM_RNK, CRD_FEAT), jnp.float32)
    eval_params, rnk_params = build_params(k_par)

    out = policy_net_forward(req, crd, eval_params, rnk_params)
    out = jax.block_until_ready(out)

    ref = reference_forward(req, crd, eval_params, rnk_params)
    assert out.shape == (BATCH, NUM_RNK)
    # bf16 MXU operands / bf16-folded biases (f32 accumulation): tolerance
    # loosened vs the pure-f32 reference.
    assert jnp.allclose(out, ref, atol=2e-2, rtol=2e-2), "mismatch vs reference"

    print("KERNEL_OK")
</pallas_src>

<mosaic_0001>
module attributes {stable_mosaic.version = 11 : i64} {
  func.func @kernel(%arg0: memref<24x128xf32, #tpu.memory_space<vmem>>, %arg1: memref<7x128x128xbf16, #tpu.memory_space<vmem>>, %arg2: memref<8x128xf32, #tpu.memory_space<vmem>>) attributes {dimension_semantics = [], scalar_prefetch = 0 : i64, scratch_operands = 0 : i64, tpu.core_type = #tpu.core_type<tc>} {
    %c0 = arith.constant 0 : index
    %c0_0 = arith.constant 0 : index
    %0 = vector.load %arg0[%c0, %c0_0] : memref<24x128xf32, #tpu.memory_space<vmem>>, vector<24x128xf32>
    %1 = arith.truncf %0 : vector<24x128xf32> to vector<24x128xbf16>
    %c0_1 = arith.constant 0 : index
    %c0_2 = arith.constant 0 : index
    %c0_3 = arith.constant 0 : index
    %2 = vector.load %arg1[%c0_1, %c0_2, %c0_3] : memref<7x128x128xbf16, #tpu.memory_space<vmem>>, vector<1x128x128xbf16>
    %3 = vector.shape_cast %2 : vector<1x128x128xbf16> to vector<128x128xbf16>
    %cst = arith.constant dense<0.000000e+00> : vector<24x128xf32>
    %4 = tpu.matmul %1, %3, %cst {dimension_numbers = #tpu.dot_dimension_numbers<[1], [0], [0], [1], [0, 0, 1, 1], [], []>} : vector<24x128xbf16>, vector<128x128xbf16>, vector<24x128xf32> -> vector<24x128xf32>
    %cst_4 = arith.constant 0.000000e+00 : f32
    %5 = vector.broadcast %cst_4 : f32 to vector<24x128xf32>
    %6 = arith.maximumf %4, %5 : vector<24x128xf32>
    %7 = arith.truncf %6 : vector<24x128xf32> to vector<24x128xbf16>
    %c1 = arith.constant 1 : index
    %c0_5 = arith.constant 0 : index
    %c0_6 = arith.constant 0 : index
    %8 = vector.load %arg1[%c1, %c0_5, %c0_6] : memref<7x128x128xbf16, #tpu.memory_space<vmem>>, vector<1x128x128xbf16>
    %9 = vector.shape_cast %8 : vector<1x128x128xbf16> to vector<128x128xbf16>
    %cst_7 = arith.constant dense<0.000000e+00> : vector<24x128xf32>
    %10 = tpu.matmul %7, %9, %cst_7 {dimension_numbers = #tpu.dot_dimension_numbers<[1], [0], [0], [1], [0, 0, 1, 1], [], []>} : vector<24x128xbf16>, vector<128x128xbf16>, vector<24x128xf32> -> vector<24x128xf32>
    %cst_8 = arith.constant 0.000000e+00 : f32
    %11 = vector.broadcast %cst_8 : f32 to vector<24x128xf32>
    %12 = arith.maximumf %10, %11 : vector<24x128xf32>
    %13 = vector.extract_strided_slice %0 {offsets = [0, 0], sizes = [8, 128], strides = [1, 1]} : vector<24x128xf32> to vector<8x128xf32>
    %14 = arith.truncf %13 : vector<8x128xf32> to vector<8x128xbf16>
    %c5 = arith.constant 5 : index
    %c0_9 = arith.constant 0 : index
    %c0_10 = arith.constant 0 : index
    %15 = vector.load %arg1[%c5, %c0_9, %c0_10] : memref<7x128x128xbf16, #tpu.memory_space<vmem>>, vector<1x128x128xbf16>
    %16 = vector.shape_cast %15 : vector<1x128x128xbf16> to vector<128x128xbf16>
    %cst_11 = arith.constant dense<0.000000e+00> : vector<8x128xf32>
    %17 = tpu.matmul %14, %16, %cst_11 {dimension_numbers = #tpu.dot_dimension_numbers<[1], [0], [0], [1], [0, 0, 1, 1], [], []>} : vector<8x128xbf16>, vector<128x128xbf16>, vector<8x128xf32> -> vector<8x128xf32>
    %18 = vector.extract_strided_slice %12 {offsets = [0, 0], sizes = [8, 128], strides = [1, 1]} : vector<24x128xf32> to vector<8x128xf32>
    %19 = arith.truncf %18 : vector<8x128xf32> to vector<8x128xbf16>
    %c2 = arith.constant 2 : index
    %c0_12 = arith.constant 0 : index
    %c0_13 = arith.constant 0 : index
    %20 = vector.load %arg1[%c2, %c0_12, %c0_13] : memref<7x128x128xbf16, #tpu.memory_space<vmem>>, vector<1x128x128xbf16>
    %21 = vector.shape_cast %20 : vector<1x128x128xbf16> to vector<128x128xbf16>
    %cst_14 = arith.constant dense<0.000000e+00> : vector<8x128xf32>
    %22 = tpu.matmul %19, %21, %cst_14 {dimension_numbers = #tpu.dot_dimension_numbers<[1], [0], [0], [1], [0, 0, 1, 1], [], []>} : vector<8x128xbf16>, vector<128x128xbf16>, vector<8x128xf32> -> vector<8x128xf32>
    %23 = arith.addf %17, %22 : vector<8x128xf32>
    %24 = vector.extract_strided_slice %12 {offsets = [8, 0], sizes = [8, 128], strides = [1, 1]} : vector<24x128xf32> to vector<8x128xf32>
    %25 = arith.truncf %24 : vector<8x128xf32> to vector<8x128xbf16>
    %c3 = arith.constant 3 : index
    %c0_15 = arith.constant 0 : index
    %c0_16 = arith.constant 0 : index
    %26 = vector.load %arg1[%c3, %c0_15, %c0_16] : memref<7x128x128xbf16, #tpu.memory_space<vmem>>, vector<1x128x128xbf16>
    %27 = vector.shape_cast %26 : vector<1x128x128xbf16> to vector<128x128xbf16>
    %cst_17 = arith.constant dense<0.000000e+00> : vector<8x128xf32>
    %28 = tpu.matmul %25, %27, %cst_17 {dimension_numbers = #tpu.dot_dimension_numbers<[1], [0], [0], [1], [0, 0, 1, 1], [], []>} : vector<8x128xbf16>, vector<128x128xbf16>, vector<8x128xf32> -> vector<8x128xf32>
    %29 = arith.addf %23, %28 : vector<8x128xf32>
    %30 = vector.extract_strided_slice %12 {offsets = [16, 0], sizes = [8, 128], strides = [1, 1]} : vector<24x128xf32> to vector<8x128xf32>
    %31 = arith.truncf %30 : vector<8x128xf32> to vector<8x128xbf16>
    %c4 = arith.constant 4 : index
    %c0_18 = arith.constant 0 : index
    %c0_19 = arith.constant 0 : index
    %32 = vector.load %arg1[%c4, %c0_18, %c0_19] : memref<7x128x128xbf16, #tpu.memory_space<vmem>>, vector<1x128x128xbf16>
    %33 = vector.shape_cast %32 : vector<1x128x128xbf16> to vector<128x128xbf16>
    %cst_20 = arith.constant dense<0.000000e+00> : vector<8x128xf32>
    %34 = tpu.matmul %31, %33, %cst_20 {dimension_numbers = #tpu.dot_dimension_numbers<[1], [0], [0], [1], [0, 0, 1, 1], [], []>} : vector<8x128xbf16>, vector<128x128xbf16>, vector<8x128xf32> -> vector<8x128xf32>
    %35 = arith.addf %29, %34 : vector<8x128xf32>
    %cst_21 = arith.constant 0.000000e+00 : f32
    %36 = vector.broadcast %cst_21 : f32 to vector<8x128xf32>
    %37 = arith.maximumf %35, %36 : vector<8x128xf32>
    %38 = arith.truncf %37 : vector<8x128xf32> to vector<8x128xbf16>
    %c6 = arith.constant 6 : index
    %c0_22 = arith.constant 0 : index
    %c0_23 = arith.constant 0 : index
    %39 = vector.load %arg1[%c6, %c0_22, %c0_23] : memref<7x128x128xbf16, #tpu.memory_space<vmem>>, vector<1x128x128xbf16>
    %40 = vector.shape_cast %39 : vector<1x128x128xbf16> to vector<128x128xbf16>
    %cst_24 = arith.constant dense<0.000000e+00> : vector<8x128xf32>
    %41 = tpu.matmul %38, %40, %cst_24 {dimension_numbers = #tpu.dot_dimension_numbers<[1], [0], [0], [1], [0, 0, 1, 1], [], []>} : vector<8x128xbf16>, vector<128x128xbf16>, vector<8x128xf32> -> vector<8x128xf32>
    %c0_25 = arith.constant 0 : index
    %c0_26 = arith.constant 0 : index
    %42 = vector.load %arg2[%c0_25, %c0_26] : memref<8x128xf32, #tpu.memory_space<vmem>>, vector<8x128xf32>
    tpu.vector_store %arg2[%c0_25, %c0_26], %41 {strides = array<i32>} : memref<8x128xf32, #tpu.memory_space<vmem>>, vector<8x128xf32>,
    return
  }
}

</mosaic_0001>

<bundles_post_ra>
// kernel: tpu_custom_call.1
= control target key start
LH: loop header
LB: loop body
LE: loop exit
PB: predicated region body
PF: predicated region fallthrough
CT: control target
= control target key end

     0   :  { %7 = vsyncpa [#allocation3], 0  ;;  %s1040_s0 = inlined_call_operand.hbm [shape: f32[24,128], index: 0, kind: input, shape index: {}]   ;;  %s1041_s1 = inlined_call_operand.hbm [shape: bf16[7,128,128], index: 1, kind: input, shape index: {}]   ;;  %s1042_s2 = inlined_call_operand.hbm [shape: f32[8,128], index: 2, kind: output, shape index: {}]  }
   0x1   :  { %8 = vsyncpa [#allocation6], 0 }
   0x2   :  { %9 = vsyncpa [#allocation4], 0  ;;  %s14_s11 = sshll.u32 %s1040_s0, 4  ;;  %s1004_s12 = smov [#allocation2]   ;;  %s15_s11 = int_to_ptr.hbm [resolvable:$true] %s14_s11 }
   0x3   :  { %s16_s13 = sshll.u32 %s1004_s12, 4  ;;  %s27_s16 = sshll.u32 %s1041_s1, 4  ;;  %s17_s13 = int_to_ptr.vmem [resolvable:$true] %s16_s13  ;;  %s28_s16 = int_to_ptr.hbm [resolvable:$true] %s27_s16 }
   0x4   :  { %s1005_s17 = smov 128   ;;  %s1006_s18 = smov 8  }
   0x5   :  { %22 = dma.hbm_to_vmem [thread:$0]  %s15_s11, 384, %s17_s13, [#allocation3], %s1005_s17, %s1005_s17, %s1006_s18  }
   0x6   :  { %s1007_s19 = smov [#allocation5]   ;;  %s1008_s21 = smov 64  }
   0x7   :  { %s29_s20 = sshll.u32 %s1007_s19, 4  ;;  %s1009_s22 = smov 4   ;;  %s30_s20 = int_to_ptr.vmem [resolvable:$true] %s29_s20 }
   0x8   :  { %35 = dma.hbm_to_vmem [thread:$0]  %s28_s16, 7168, %s30_s20, [#allocation6], %s1008_s21, %s1008_s21, %s1009_s22  }
   0x9   :  { %998 = dma.done.wait [#allocation3], 384  }
   0xa   :  { %999 = vsyncadd [#allocation3], 4294966912 }
   0xb   :  { %1000 = dma.done.wait [#allocation6], 7168  }
   0xc   :  { %1001 = vsyncadd [#allocation6], 4294960128  ;;  %v870_v0 = vld [vmem:[#allocation5 + $0x38] sm:$0xff]  ;;  %v869_v1 = vld [vmem:[#allocation5 + $0x30] sm:$0xff]  ;;  %s1010_s0 = smov [#allocation7]   ;;  %s628_s25 = sshll.u32 %s1042_s2, 4  ;;  %s629_s25 = int_to_ptr.hbm [resolvable:$true] %s628_s25 }
   0xd   :  { %113 = vmatpush.bf16.msra.mxu0 %v870_v0  ;;  %v868_v2 = vld [vmem:[#allocation5 + $0x28] sm:$0xff]  ;;  %v867_v3 = vld [vmem:[#allocation5 + $0x20] sm:$0xff]  ;;  %v866_v4 = vld [vmem:[#allocation5 + $0x18] sm:$0xff]  ;;  %s626_s1 = sshll.u32 %s1010_s0, 4  ;;  %s627_s1 = int_to_ptr.vmem [resolvable:$true] %s626_s1 }
   0xe   :  { %v878_v5 = vld [vmem:[#allocation5 + $0x78] sm:$0xff]  ;;  %v865_v6 = vld [vmem:[#allocation5 + $0x10] sm:$0xff]  ;;  %v864_v8 = vld [vmem:[#allocation5 + $0x8] sm:$0xff] }
   0xf   :  { %201 = vmatpush.bf16.msra.mxu1 %v878_v5  ;;  %v877_v7 = vld [vmem:[#allocation5 + $0x70] sm:$0xff]  ;;  %v876_v9 = vld [vmem:[#allocation5 + $0x68] sm:$0xff]  ;;  %v863_v10 = vld [vmem:[#allocation5] sm:$0xff] }
  0x10   :  { %v1032_v11 = vld [vmem:[#allocation2] sm:$0xff]  ;;  %v45_v12 = vld [vmem:[#allocation2 + $0x8] sm:$0xff]  ;;  %v875_v13 = vld [vmem:[#allocation5 + $0x60] sm:$0xff] }
  0x11   :  { %114 = vmatpush.bf16.msra.mxu0 %v869_v1  ;;  %v47_v14 = vpack.c.bf16 %v45_v12, %v1032_v11  ;;  %v874_v15 = vld [vmem:[#allocation5 + $0x58] sm:$0xff]  ;;  %v873_v18 = vld [vmem:[#allocation5 + $0x50] sm:$0xff]  ;;  %v872_v19 = vld [vmem:[#allocation5 + $0x48] sm:$0xff]  ;;  %v222_v56 = vpack.c.bf16 %v1032_v11, %v1032_v11 }
  0x12   :  { %v46_v16 = vld [vmem:[#allocation2 + $0x10] sm:$0xff]  ;;  %v871_v20 = vld [vmem:[#allocation5 + $0x40] sm:$0xff]  ;;  %v885_v23 = vld [vmem:[#allocation5 + $0x170] sm:$0xff] }
  0x13   :  { %202 = vmatpush.bf16.msra.mxu1 %v877_v7  ;;  %v48_v17 = vpack.c.bf16 %v46_v16, %v46_v16  ;;  %v886_v21 = vld [vmem:[#allocation5 + $0x178] sm:$0xff]  ;;  %v893_v24 = vld [vmem:[#allocation5 + $0xb0] sm:$0xff]  ;;  %v884_v30 = vld [vmem:[#allocation5 + $0x168] sm:$0xff] }
  0x14   :  { %v894_v22 = vld [vmem:[#allocation5 + $0xb8] sm:$0xff]  ;;  %367 = vmatpush.bf16.msra.mxu3 %v886_v21  ;;  %v901_v28 = vld [vmem:[#allocation5 + $0xf0] sm:$0xff]  ;;  %v892_v31 = vld [vmem:[#allocation5 + $0xa8] sm:$0xff] }
  0x15   :  { %115 = vmatpush.bf16.msra.mxu0 %v868_v2  ;;  %306 = vmatpush.bf16.msra.mxu2 %v894_v22  ;;  %v902_v25 = vld [vmem:[#allocation5 + $0xf8] sm:$0xff]  ;;  %v909_v29 = vld [vmem:[#allocation5 + $0x130] sm:$0xff]  ;;  %v900_v32 = vld [vmem:[#allocation5 + $0xe8] sm:$0xff] }
  0x16   :  { %v910_v27 = vld [vmem:[#allocation5 + $0x138] sm:$0xff]  ;;  %v908_v33 = vld [vmem:[#allocation5 + $0x128] sm:$0xff]  ;;  %v883_v34 = vld [vmem:[#allocation5 + $0x160] sm:$0xff] }
  0x17   :  { %203 = vmatpush.bf16.msra.mxu1 %v876_v9  ;;  %v891_v35 = vld [vmem:[#allocation5 + $0xa0] sm:$0xff]  ;;  %v882_v41 = vld [vmem:[#allocation5 + $0x158] sm:$0xff]  ;;  %v881_v44 = vld [vmem:[#allocation5 + $0x150] sm:$0xff] }
  0x18   :  { %368 = vmatpush.bf16.msra.mxu3 %v885_v23  ;;  %v899_v39 = vld [vmem:[#allocation5 + $0xe0] sm:$0xff]  ;;  %v890_v42 = vld [vmem:[#allocation5 + $0x98] sm:$0xff]  ;;  %v889_v45 = vld [vmem:[#allocation5 + $0x90] sm:$0xff] }
  0x19   :  { %116 = vmatpush.bf16.msra.mxu0 %v867_v3  ;;  %307 = vmatpush.bf16.msra.mxu2 %v893_v24  ;;  %v898_v43 = vld [vmem:[#allocation5 + $0xd8] sm:$0xff]  ;;  %v880_v47 = vld [vmem:[#allocation5 + $0x148] sm:$0xff]  ;;  %v879_v52 = vld [vmem:[#allocation5 + $0x140] sm:$0xff] }
  0x1a   :  { %v888_v48 = vld [vmem:[#allocation5 + $0x88] sm:$0xff]  ;;  %v907_v53 = vld [vmem:[#allocation5 + $0x120] sm:$0xff]  ;;  %v897_v55 = vld [vmem:[#allocation5 + $0xd0] sm:$0xff] }
  0x1b   :  { %204 = vmatpush.bf16.msra.mxu1 %v875_v13  ;;  %v887_v54 = vld [vmem:[#allocation5 + $0x80] sm:$0xff]  ;;  %v906_v57 = vld [vmem:[#allocation5 + $0x118] sm:$0xff]  ;;  %v896_v58 = vld [vmem:[#allocation5 + $0xc8] sm:$0xff] }
  0x1c   :  { %369 = vmatpush.bf16.msra.mxu3 %v884_v30  ;;  %v905_v59 = vld [vmem:[#allocation5 + $0x110] sm:$0xff]  ;;  %v895_v60 = vld [vmem:[#allocation5 + $0xc0] sm:$0xff]  ;;  %v904_v61 = vld [vmem:[#allocation5 + $0x108] sm:$0xff] }
  0x1d   :  { %117 = vmatpush.bf16.msra.mxu0 %v866_v4  ;;  %308 = vmatpush.bf16.msra.mxu2 %v892_v31  ;;  %v903_v62 = vld [vmem:[#allocation5 + $0x100] sm:$0xff]  ;;  %v918_v63 = vld [vmem:[#allocation5 + $0x1b8] sm:$0xff]  ;;  %v917_v0 = vld [vmem:[#allocation5 + $0x1b0] sm:$0xff] }
  0x1e   :  { %v916_v1 = vld [vmem:[#allocation5 + $0x1a8] sm:$0xff]  ;;  %v915_v12 = vld [vmem:[#allocation5 + $0x1a0] sm:$0xff] }
  0x1f   :  { %205 = vmatpush.bf16.msra.mxu1 %v874_v15  ;;  %v913_v15 = vld [vmem:[#allocation5 + $0x190] sm:$0xff] }
  0x20   :  { %370 = vmatpush.bf16.msra.mxu3 %v883_v34 }
  0x21   :  { %118 = vmatpush.bf16.msra.mxu0 %v865_v6  ;;  %309 = vmatpush.bf16.msra.mxu2 %v891_v35 }
  0x23   :  { %206 = vmatpush.bf16.msra.mxu1 %v873_v18  ;;  %v911_v18 = vld [vmem:[#allocation5 + $0x180] sm:$0xff] }
  0x24   :  { %371 = vmatpush.bf16.msra.mxu3 %v882_v41 }
  0x25   :  { %119 = vmatpush.bf16.msra.mxu0 %v864_v8  ;;  %310 = vmatpush.bf16.msra.mxu2 %v890_v42 }
  0x27   :  { %207 = vmatpush.bf16.msra.mxu1 %v872_v19 }
  0x28   :  { %372 = vmatpush.bf16.msra.mxu3 %v881_v44 }
  0x29   :  { %120 = vmatpush.bf16.msra.mxu0 %v863_v10  ;;  %311 = vmatpush.bf16.msra.mxu2 %v889_v45 }
  0x2b   :  { %208 = vmatpush.bf16.msra.mxu1 %v871_v20 }
  0x2c   :  { %121 = vmatmul.bf16.vlgmr.msra.gmra.mxu0 %v47_v14  ;;  %373 = vmatpush.bf16.msra.mxu3 %v880_v47  ;;  %v914_v14 = vld [vmem:[#allocation5 + $0x198] sm:$0xff] }
  0x2d   :  { %446 = vmatpush.bf16.msrb.mxu0 %v902_v25  ;;  %312 = vmatpush.bf16.msra.mxu2 %v888_v48 }
  0x2f   :  { %526 = vmatpush.bf16.msrb.mxu1 %v910_v27 }
  0x30   :  { %374 = vmatpush.bf16.msra.mxu3 %v879_v52 }
  0x31   :  { %447 = vmatpush.bf16.msrb.mxu0 %v901_v28  ;;  %313 = vmatpush.bf16.msra.mxu2 %v887_v54 }
  0x33   :  { %527 = vmatpush.bf16.msrb.mxu1 %v909_v29  ;;  %375 = vmatmul.bf16.vlgmr.msra.gmra.mxu3 %v222_v56 }
  0x35   :  { %448 = vmatpush.bf16.msrb.mxu0 %v900_v32  ;;  %607 = vmatpush.bf16.msrb.mxu2 %v918_v63 }
  0x37   :  { %528 = vmatpush.bf16.msrb.mxu1 %v908_v33 }
  0x39   :  { %449 = vmatpush.bf16.msrb.mxu0 %v899_v39  ;;  %608 = vmatpush.bf16.msrb.mxu2 %v917_v0 }
  0x3b   :  { %529 = vmatpush.bf16.msrb.mxu1 %v907_v53 }
  0x3c   :  { %126 = vmatmul.bf16.gmra.mxu0 %v48_v17  ;;  %v912_v17 = vld [vmem:[#allocation5 + $0x188] sm:$0xff] }
  0x3d   :  { %450 = vmatpush.bf16.msrb.mxu0 %v898_v43  ;;  %609 = vmatpush.bf16.msrb.mxu2 %v916_v1 }
  0x3f   :  { %530 = vmatpush.bf16.msrb.mxu1 %v906_v57 }
  0x41   :  { %451 = vmatpush.bf16.msrb.mxu0 %v897_v55  ;;  %610 = vmatpush.bf16.msrb.mxu2 %v915_v12 }
  0x43   :  { %531 = vmatpush.bf16.msrb.mxu1 %v905_v59 }
  0x45   :  { %452 = vmatpush.bf16.msrb.mxu0 %v896_v58  ;;  %611 = vmatpush.bf16.msrb.mxu2 %v914_v14 }
  0x47   :  { %532 = vmatpush.bf16.msrb.mxu1 %v904_v61 }
  0x49   :  { %453 = vmatpush.bf16.msrb.mxu0 %v895_v60  ;;  %612 = vmatpush.bf16.msrb.mxu2 %v913_v15 }
  0x4b   :  { %533 = vmatpush.bf16.msrb.mxu1 %v903_v62 }
  0x4d   :  { %613 = vmatpush.bf16.msrb.mxu2 %v912_v17 }
  0x51   :  { %614 = vmatpush.bf16.msrb.mxu2 %v911_v18 }
  0xa9   :  { %v122_v26 = vpop.f32.mrf.mxu0 }
  0xaa   :  { %v131_v37 = vmax.f32 %v122_v26, 0.0 }
  0xb1   :  { %v124_v36 = vpop.f32.mrf.mxu0 }
  0xb2   :  { %v132_v38 = vmax.f32 %v124_v36, 0.0 }
  0xb4   :  { %v134_v40 = vpack.c.bf16 %v132_v38, %v131_v37 }
  0xb6   :  { %209 = vmatmul.bf16.vlgmr.msra.gmra.mxu1 %v134_v40  ;;  %v376_v13 = vpop.f32.mrf.mxu3 }
  0xb9   :  { %v127_v46 = vpop.f32.mrf.mxu0 }
  0xba   :  { %v133_v49 = vmax.f32 %v127_v46, 0.0 }
  0xbc   :  { %v135_v51 = vpack.c.bf16 %v133_v49, %v133_v49 }
  0xbe   :  { %v378_v16 = vpop.f32.mrf.mxu3 }
  0xc1   :  { %v129_v50 = vpop.f32.mrf.mxu0 }
  0xc6   :  { %214 = vmatmul.bf16.gmra.mxu1 %v135_v51 }
 0x133   :  { %v210_v2 = vpop.f32.mrf.mxu1 }
 0x134   :  { %v219_v3 = vmax.f32 %v210_v2, 0.0 }
 0x136   :  { %v240_v4 = vpack.c.bf16 %v219_v3, %v219_v3 }
 0x138   :  { %314 = vmatmul.bf16.vlgmr.msra.gmra.mxu2 %v240_v4 }
 0x13b   :  { %v212_v5 = vpop.f32.mrf.mxu1 }
 0x13c   :  { %v220_v6 = vmax.f32 %v212_v5, 0.0 }
 0x13e   :  { %v380_v7 = vpack.c.bf16 %v220_v6, %v220_v6 }
 0x140   :  { %454 = vmatmul.bf16.vlgmr.msrb.gmra.mxu0 %v380_v7 }
 0x143   :  { %v215_v8 = vpop.f32.mrf.mxu1 }
 0x144   :  { %v221_v9 = vmax.f32 %v215_v8, 0.0 }
 0x146   :  { %v460_v10 = vpack.c.bf16 %v221_v9, %v221_v9 }
 0x148   :  { %534 = vmatmul.bf16.vlgmr.msrb.gmra.mxu1 %v460_v10 }
 0x14b   :  { %v217_v11 = vpop.f32.mrf.mxu1 }
 0x1bb   :  { %v315_v19 = vpop.f32.mrf.mxu2 }
 0x1bc   :  { %v377_v21 = vadd.f32 %v376_v13, %v315_v19 }
 0x1bd   :  { %v455_v20 = vpop.f32.mrf.mxu0 }
 0x1be   :  { %v459_v23 = vadd.f32 %v455_v20, %v377_v21 }
 0x1c3   :  { %v317_v22 = vpop.f32.mrf.mxu2 }
 0x1c5   :  { %v457_v24 = vpop.f32.mrf.mxu0  ;;  %v535_v25 = vpop.f32.mrf.mxu1 }
 0x1c6   :  { %v539_v26 = vadd.f32 %v535_v25, %v459_v23 }
 0x1c8   :  { %v540_v27 = vmax.f32 %v539_v26, 0.0 }
 0x1ca   :  { %v541_v28 = vpack.c.bf16 %v540_v27, %v540_v27 }
 0x1cc   :  { %615 = vmatmul.bf16.vlgmr.msrb.gmra.mxu2 %v541_v28 }
 0x1cd   :  { %v537_v29 = vpop.f32.mrf.mxu1 }
 0x24f   :  { %v616_v30 = vpop.f32.mrf.mxu2 }
 0x250   :  { %620 = vst [vmem:[#allocation7] sm:$0xff] %v616_v30 }
 0x251   :  { %631 = dma.vmem_to_hbm [thread:$0]  %s627_s1, 128, %s629_s25, [#allocation4]  }
 0x257   :  { %v618_v31 = vpop.f32.mrf.mxu2 }
 0x258   :  { %1002 = dma.done.wait [#allocation4], 128  }
 0x259   :  { %1003 = vsyncadd [#allocation4], 4294967168 }
 0x25a   :  { %636 = vsyncpa [#allocation3], 1 }
 0x25b   :  { %637 = vsyncpa [#allocation6], 1 }
 0x25c   :  { %638 = vsyncpa [#allocation4], 1 }

</bundles_post_ra>
